<compile_context>
chip_gen: v7x
topology: tpu7x:2x2x1
jax: 0.10.0
libtpu: 0.0.40
codegen_flags: <defaults>
</compile_context>

<pallas_src>
import jax
import jax.numpy as jnp
from jax.experimental import pallas as pl
from jax.experimental.pallas import tpu as pltpu

ALPHA = 0.2                       # LeakyReLU slope
BN_EPS = 1e-5                     # PyTorch BatchNorm2d default eps
VMEM_LIMIT = 32 * 1024 * 1024     # explicit scoped-VMEM cap (portable v5e/v6e/v7x)


# ---------------------------------------------------------------------------
# Glue: layout-only transforms (cheap XLA ops, NO data expansion)
# ---------------------------------------------------------------------------
def space_to_depth2(x):
    """[N,H,W,C] (H,W even) -> [N,H/2,W/2,4C]; channel order (row-phase, col-phase, c)."""
    n, h, w, c = x.shape
    x = x.reshape(n, h // 2, 2, w // 2, 2, c)
    x = jnp.transpose(x, (0, 1, 3, 2, 4, 5))
    return x.reshape(n, h // 2, w // 2, 4 * c)


def group_weight_s2(w_oihw):
    """PyTorch [OC,IC,4,4] -> [2,2,4*IC,OC] tap-group weights matching space_to_depth2.

    Tap group (di,dj) contracts the s2d channels (ph,pw,c) against
    w[oc, c, 2*di+ph, 2*dj+pw], so a stride-2 k=4 conv becomes 4 matmuls over
    contiguous slices of the s2d map."""
    oc, ic, kh, kw = w_oihw.shape
    w = jnp.transpose(w_oihw, (2, 3, 1, 0))       # [kh, kw, ic, oc]
    w = w.reshape(2, 2, 2, 2, ic, oc)             # [di, ph, dj, pw, ic, oc]
    w = jnp.transpose(w, (0, 2, 1, 3, 4, 5))      # [di, dj, ph, pw, ic, oc]
    return w.reshape(2, 2, 4 * ic, oc)


# ---------------------------------------------------------------------------
# Kernel A: Conv2d(3,64,k4,s2,p1) + LeakyReLU, one image per grid program
# ---------------------------------------------------------------------------
def conv1_lrelu_kernel(x_ref, w_ref, b_ref, o_ref):
    # x_ref : [OH1+1, OW1+1, 12] f32 (space-to-depth of the zero-padded image)
    # w_ref : [2, 2, 12, 64] tap-group weights, b_ref: [1, 64]
    # o_ref : [OH1*OW1, 64] bf16
    hh, ww, c4 = x_ref.shape
    oh, ow = hh - 1, ww - 1
    c1 = w_ref.shape[3]

    acc = jnp.zeros((oh * ow, c1), jnp.float32)
    for di in range(2):                                    # in-kernel "im2col":
        for dj in range(2):                                # 4 contiguous tap-group slices
            # slice second-minor extent = oh (multiple of 8) -> layout-friendly merge
            a = x_ref[di:di + oh, dj:dj + ow, :].reshape(oh * ow, c4)
            acc = acc + jnp.dot(a, w_ref[di, dj],
                                preferred_element_type=jnp.float32)
    y = acc + b_ref[...]
    y = jnp.maximum(y, ALPHA * y)                          # LeakyReLU (single VPU max)
    o_ref[...] = y.astype(o_ref.dtype)                     # cast to bf16 only at the store


# ---------------------------------------------------------------------------
# Kernel B: Conv2d(64,128,k4,s2,p1) + BatchNorm2d(batch stats) + LeakyReLU
#           + Conv2d(128,1,k4,s1,p1) + Sigmoid  -- fully fused, y2 stays in VMEM
# ---------------------------------------------------------------------------
def conv2_bn_conv3_kernel(y1s_ref, w2_ref, b2_ref, g_ref, bt_ref,
                          w3_ref, b3_ref, o_ref, y2p_ref):
    # y1s_ref: [N, OH2+1, OW2+1, 256] bf16 (s2d of zero-padded y1)
    # w2_ref : [2, 2, 256, 128] bf16; b2/g/bt: [1, 128] f32
    # w3_ref : [4, 4, 128] f32; b3_ref: [1, 1, 1] f32
    # o_ref  : [N, OH3, OW3] f32
    # y2p_ref: [N, OH2+2, OW2+2, 128] f32 VMEM scratch (zero-padded BN/leaky map)
    nb, oh3, ow3 = o_ref.shape
    noh = y2p_ref.shape[1] - 2
    now = y2p_ref.shape[2] - 2
    c2 = y2p_ref.shape[3]

    b2 = b2_ref[...]

    # conv3 consumes a zero-padded map of leaky(BN(conv2)); the scratch holds it.
    y2p_ref[...] = jnp.zeros(y2p_ref.shape, y2p_ref.dtype)

    # --- conv2 as tap-group matmuls (native bf16 MXU, f32 accumulate), with
    #     fused BatchNorm batch statistics ---------------------------------
    s1 = jnp.zeros((1, c2), jnp.float32)     # per-channel sum
    s2 = jnp.zeros((1, c2), jnp.float32)     # per-channel sum of squares
    for b in range(nb):
        for r in range(noh):                               # one output row at a time
            row = jnp.zeros((now, c2), jnp.float32)
            for di in range(2):
                for dj in range(2):
                    a = y1s_ref[b, di + r, dj:dj + now, :]     # [OW2, 256] bf16, contiguous
                    row = row + jnp.dot(a, w2_ref[di, dj],
                                        preferred_element_type=jnp.float32)
            row = row + b2
            s1 = s1 + jnp.sum(row, axis=0, keepdims=True)
            s2 = s2 + jnp.sum(row * row, axis=0, keepdims=True)
            y2p_ref[b, 1 + r, 1:1 + now, :] = row          # interior of padded map

    # --- BatchNorm2d: training-mode batch statistics (biased var) + LeakyReLU
    m = float(nb * noh * now)
    mean = s1 * (1.0 / m)
    var = jnp.maximum(s2 * (1.0 / m) - mean * mean, 0.0)
    scale = g_ref[...] * jax.lax.rsqrt(var + BN_EPS)       # rsqrt on the EUP
    shift = bt_ref[...] - mean * scale
    y2 = y2p_ref[:, 1:1 + noh, 1:1 + now, :]
    z = y2 * scale.reshape(1, 1, 1, c2) + shift.reshape(1, 1, 1, c2)
    y2p_ref[:, 1:1 + noh, 1:1 + now, :] = jnp.maximum(z, ALPHA * z)

    # --- conv3 (OC=1): VPU multiply + lane reduction (no wasted N=1 matmul) --
    acc = jnp.zeros((nb, oh3, ow3), jnp.float32) + b3_ref[...]
    for i in range(4):
        for j in range(4):
            patch = y2p_ref[:, i:i + oh3, j:j + ow3, :]    # [N, OH3, OW3, 128]
            wt = w3_ref[i:i + 1, j:j + 1, :]               # [1, 1, 128]
            acc = acc + jnp.sum(patch * wt, axis=-1)

    # sigmoid: exp + reciprocal both ride the EUP slot (approx recip ~free)
    o_ref[...] = pl.reciprocal(1.0 + jnp.exp(-acc), approx=True)


# ---------------------------------------------------------------------------
# Forward pass
# ---------------------------------------------------------------------------
def discriminator_forward(x_nchw, params):
    n, c_in, h, w = x_nchw.shape
    assert c_in == 3 and h % 4 == 0 and w % 4 == 0
    oh1, ow1 = h // 2, w // 2
    oh2, ow2 = oh1 // 2, ow1 // 2
    oh3, ow3 = oh2 - 1, ow2 - 1
    c1, c2 = 64, 128

    # NCHW -> NHWC, zero-pad, space-to-depth (layout only, no expansion)
    x = jnp.transpose(x_nchw, (0, 2, 3, 1)).astype(jnp.float32)
    xs = space_to_depth2(jnp.pad(x, ((0, 0), (1, 1), (1, 1), (0, 0))))  # [N,OH1+1,OW1+1,12]

    w1g = group_weight_s2(params["w1"]).astype(jnp.float32)
    b1 = params["b1"].reshape(1, c1)

    # --- Kernel A: conv1 + LeakyReLU; batch grid marked "parallel" ----------
    y1 = pl.pallas_call(
        conv1_lrelu_kernel,
        out_shape=jax.ShapeDtypeStruct((n, oh1 * ow1, c1), jnp.bfloat16),
        grid=(n,),
        in_specs=[
            pl.BlockSpec((None, oh1 + 1, ow1 + 1, 12), lambda b: (b, 0, 0, 0)),
            pl.BlockSpec((2, 2, 12, c1), lambda b: (0, 0, 0, 0)),
            pl.BlockSpec((1, c1), lambda b: (0, 0)),
        ],
        out_specs=pl.BlockSpec((None, oh1 * ow1, c1), lambda b: (b, 0, 0)),
        compiler_params=pltpu.CompilerParams(
            dimension_semantics=("parallel",),
            vmem_limit_bytes=VMEM_LIMIT),
    )(xs, w1g, b1)

    # The only HBM intermediate (bf16 -> half the round-trip traffic);
    # pad + space-to-depth are layout-only XLA ops on the compact tensor.
    y1 = y1.reshape(n, oh1, ow1, c1)
    y1s = space_to_depth2(jnp.pad(y1, ((0, 0), (1, 1), (1, 1), (0, 0))))  # [N,OH2+1,OW2+1,256]

    w2g = group_weight_s2(params["w2"]).astype(jnp.bfloat16)   # native bf16 MXU path
    b2 = params["b2"].reshape(1, c2).astype(jnp.float32)
    gamma = params["gamma"].reshape(1, c2).astype(jnp.float32)
    beta = params["beta"].reshape(1, c2).astype(jnp.float32)
    w3t = jnp.transpose(params["w3"][0], (1, 2, 0)).astype(jnp.float32)  # [4,4,128]
    b3 = params["b3"].reshape(1, 1, 1).astype(jnp.float32)

    # --- Kernel B: conv2 + BN + LeakyReLU + conv3 + Sigmoid, fully fused ----
    out = pl.pallas_call(
        conv2_bn_conv3_kernel,
        out_shape=jax.ShapeDtypeStruct((n, oh3, ow3), jnp.float32),
        in_specs=[
            pl.BlockSpec((n, oh2 + 1, ow2 + 1, 4 * c1), lambda: (0, 0, 0, 0)),
            pl.BlockSpec((2, 2, 4 * c1, c2), lambda: (0, 0, 0, 0)),
            pl.BlockSpec((1, c2), lambda: (0, 0)),
            pl.BlockSpec((1, c2), lambda: (0, 0)),
            pl.BlockSpec((1, c2), lambda: (0, 0)),
            pl.BlockSpec((4, 4, c2), lambda: (0, 0, 0)),
            pl.BlockSpec((1, 1, 1), lambda: (0, 0, 0)),
        ],
        out_specs=pl.BlockSpec((n, oh3, ow3), lambda: (0, 0, 0)),
        scratch_shapes=[pltpu.VMEM((n, oh2 + 2, ow2 + 2, c2), jnp.float32)],
        compiler_params=pltpu.CompilerParams(vmem_limit_bytes=VMEM_LIMIT),
    )(y1s, w2g, b2, gamma, beta, w3t, b3)

    return out[:, None, :, :]    # NCHW: [N, 1, OH3, OW3]


# ---------------------------------------------------------------------------
# Params + pure-XLA reference (numerical self-check only)
# ---------------------------------------------------------------------------
def init_params(key):
    ks = jax.random.split(key, 3)
    return {
        "w1": 0.02 * jax.random.normal(ks[0], (64, 3, 4, 4), jnp.float32),
        "b1": jnp.zeros((64,), jnp.float32),
        "w2": 0.02 * jax.random.normal(ks[1], (128, 64, 4, 4), jnp.float32),
        "b2": jnp.zeros((128,), jnp.float32),
        "w3": 0.02 * jax.random.normal(ks[2], (1, 128, 4, 4), jnp.float32),
        "b3": jnp.zeros((1,), jnp.float32),
        "gamma": jnp.ones((128,), jnp.float32),   # BatchNorm2d defaults
        "beta": jnp.zeros((128,), jnp.float32),
    }


def reference_forward(x_nchw, params):
    def conv(x, w_oihw, b, stride):
        wk = jnp.transpose(w_oihw, (2, 3, 1, 0))           # OIHW -> HWIO
        dn = jax.lax.conv_dimension_numbers(x.shape, wk.shape, ("NHWC", "HWIO", "NHWC"))
        y = jax.lax.conv_general_dilated(x, wk, (stride, stride), ((1, 1), (1, 1)),
                                         dimension_numbers=dn)
        return y + b.reshape(1, 1, 1, -1)

    x = jnp.transpose(x_nchw, (0, 2, 3, 1)).astype(jnp.float32)
    y = conv(x, params["w1"], params["b1"], 2)
    y = jnp.maximum(y, ALPHA * y)
    y = conv(y, params["w2"], params["b2"], 2)
    mean = jnp.mean(y, axis=(0, 1, 2), keepdims=True)
    var = jnp.mean(jnp.square(y - mean), axis=(0, 1, 2), keepdims=True)
    y = (y - mean) / jnp.sqrt(var + BN_EPS)
    y = y * params["gamma"].reshape(1, 1, 1, -1) + params["beta"].reshape(1, 1, 1, -1)
    y = jnp.maximum(y, ALPHA * y)
    y = conv(y, params["w3"], params["b3"], 1)
    y = jax.nn.sigmoid(y)
    return jnp.transpose(y, (0, 3, 1, 2))


if __name__ == "__main__":
    key = jax.random.PRNGKey(0)
    k_x, k_p = jax.random.split(key)

    x = jax.random.normal(k_x, (2, 3, 16, 16), jnp.float32)
    params = init_params(k_p)

    out = jax.block_until_ready(discriminator_forward(x, params))

    assert out.shape == (2, 1, 3, 3), out.shape
    assert bool(jnp.all(jnp.isfinite(out)))
    assert bool(jnp.all((out > -1e-2) & (out < 1.0 + 1e-2)))   # ~sigmoid range

    ref = jax.block_until_ready(reference_forward(x, params))
    err = float(jnp.max(jnp.abs(out - ref)))
    assert err < 5e-2, f"max abs err vs reference: {err}"      # bf16 y1/w2 + approx recip slack

    print("KERNEL_OK")
</pallas_src>

<mosaic_0001>
module attributes {stable_mosaic.version = 11 : i64} {
  func.func @conv1_lrelu_kernel(%arg0: i32, %arg1: memref<1x9x9x12xf32, #tpu.memory_space<vmem>>, %arg2: memref<2x2x12x64xf32, #tpu.memory_space<vmem>>, %arg3: memref<1x64xf32, #tpu.memory_space<vmem>>, %arg4: memref<1x64x64xbf16, #tpu.memory_space<vmem>>) attributes {dimension_semantics = [#tpu.dimension_semantics<parallel>], iteration_bounds = array<i64: 2>, scalar_prefetch = 0 : i64, scratch_operands = 0 : i64, tpu.core_type = #tpu.core_type<tc>, window_params = [{transform_indices = @transform_0, window_bounds = array<i64: 1, 9, 9, 12>}, {pipeline_mode = #tpu.pipeline_mode<synchronous>, transform_indices = @transform_1, window_bounds = array<i64: 2, 2, 12, 64>}, {pipeline_mode = #tpu.pipeline_mode<synchronous>, transform_indices = @transform_2, window_bounds = array<i64: 1, 64>}, {transform_indices = @transform_3, window_bounds = array<i64: 1, 64, 64>}]} {
    %cst = arith.constant 0.000000e+00 : f32
    %0 = vector.broadcast %cst : f32 to vector<64x64xf32>
    %c0 = arith.constant 0 : index
    %c0_0 = arith.constant 0 : index
    %c0_1 = arith.constant 0 : index
    %c0_2 = arith.constant 0 : index
    %1 = vector.load %arg1[%c0, %c0_0, %c0_1, %c0_2] : memref<1x9x9x12xf32, #tpu.memory_space<vmem>>, vector<1x8x8x12xf32>
    %2 = vector.shape_cast %1 : vector<1x8x8x12xf32> to vector<8x8x12xf32>
    %3 = vector.shape_cast %2 : vector<8x8x12xf32> to vector<64x12xf32>
    %c0_3 = arith.constant 0 : index
    %c0_4 = arith.constant 0 : index
    %c0_5 = arith.constant 0 : index
    %c0_6 = arith.constant 0 : index
    %4 = vector.load %arg2[%c0_3, %c0_4, %c0_5, %c0_6] : memref<2x2x12x64xf32, #tpu.memory_space<vmem>>, vector<1x1x12x64xf32>
    %5 = vector.shape_cast %4 : vector<1x1x12x64xf32> to vector<12x64xf32>
    %cst_7 = arith.constant dense<0.000000e+00> : vector<64x64xf32>
    %6 = tpu.matmul %3, %5, %cst_7 {dimension_numbers = #tpu.dot_dimension_numbers<[1], [0], [0], [1], [0, 0, 1, 1], [], []>} : vector<64x12xf32>, vector<12x64xf32>, vector<64x64xf32> -> vector<64x64xf32>
    %7 = arith.addf %0, %6 : vector<64x64xf32>
    %c0_8 = arith.constant 0 : index
    %c0_9 = arith.constant 0 : index
    %c1 = arith.constant 1 : index
    %c0_10 = arith.constant 0 : index
    %8 = vector.load %arg1[%c0_8, %c0_9, %c1, %c0_10] : memref<1x9x9x12xf32, #tpu.memory_space<vmem>>, vector<1x8x8x12xf32>
    %9 = vector.shape_cast %8 : vector<1x8x8x12xf32> to vector<8x8x12xf32>
    %10 = vector.shape_cast %9 : vector<8x8x12xf32> to vector<64x12xf32>
    %c0_11 = arith.constant 0 : index
    %c1_12 = arith.constant 1 : index
    %c0_13 = arith.constant 0 : index
    %c0_14 = arith.constant 0 : index
    %11 = vector.load %arg2[%c0_11, %c1_12, %c0_13, %c0_14] : memref<2x2x12x64xf32, #tpu.memory_space<vmem>>, vector<1x1x12x64xf32>
    %12 = vector.shape_cast %11 : vector<1x1x12x64xf32> to vector<12x64xf32>
    %cst_15 = arith.constant dense<0.000000e+00> : vector<64x64xf32>
    %13 = tpu.matmul %10, %12, %cst_15 {dimension_numbers = #tpu.dot_dimension_numbers<[1], [0], [0], [1], [0, 0, 1, 1], [], []>} : vector<64x12xf32>, vector<12x64xf32>, vector<64x64xf32> -> vector<64x64xf32>
    %14 = arith.addf %7, %13 : vector<64x64xf32>
    %c0_16 = arith.constant 0 : index
    %c1_17 = arith.constant 1 : index
    %c0_18 = arith.constant 0 : index
    %c0_19 = arith.constant 0 : index
    %15 = vector.load %arg1[%c0_16, %c1_17, %c0_18, %c0_19] : memref<1x9x9x12xf32, #tpu.memory_space<vmem>>, vector<1x8x8x12xf32>
    %16 = vector.shape_cast %15 : vector<1x8x8x12xf32> to vector<8x8x12xf32>
    %17 = vector.shape_cast %16 : vector<8x8x12xf32> to vector<64x12xf32>
    %c1_20 = arith.constant 1 : index
    %c0_21 = arith.constant 0 : index
    %c0_22 = arith.constant 0 : index
    %c0_23 = arith.constant 0 : index
    %18 = vector.load %arg2[%c1_20, %c0_21, %c0_22, %c0_23] : memref<2x2x12x64xf32, #tpu.memory_space<vmem>>, vector<1x1x12x64xf32>
    %19 = vector.shape_cast %18 : vector<1x1x12x64xf32> to vector<12x64xf32>
    %cst_24 = arith.constant dense<0.000000e+00> : vector<64x64xf32>
    %20 = tpu.matmul %17, %19, %cst_24 {dimension_numbers = #tpu.dot_dimension_numbers<[1], [0], [0], [1], [0, 0, 1, 1], [], []>} : vector<64x12xf32>, vector<12x64xf32>, vector<64x64xf32> -> vector<64x64xf32>
    %21 = arith.addf %14, %20 : vector<64x64xf32>
    %c0_25 = arith.constant 0 : index
    %c1_26 = arith.constant 1 : index
    %c1_27 = arith.constant 1 : index
    %c0_28 = arith.constant 0 : index
    %22 = vector.load %arg1[%c0_25, %c1_26, %c1_27, %c0_28] : memref<1x9x9x12xf32, #tpu.memory_space<vmem>>, vector<1x8x8x12xf32>
    %23 = vector.shape_cast %22 : vector<1x8x8x12xf32> to vector<8x8x12xf32>
    %24 = vector.shape_cast %23 : vector<8x8x12xf32> to vector<64x12xf32>
    %c1_29 = arith.constant 1 : index
    %c1_30 = arith.constant 1 : index
    %c0_31 = arith.constant 0 : index
    %c0_32 = arith.constant 0 : index
    %25 = vector.load %arg2[%c1_29, %c1_30, %c0_31, %c0_32] : memref<2x2x12x64xf32, #tpu.memory_space<vmem>>, vector<1x1x12x64xf32>
    %26 = vector.shape_cast %25 : vector<1x1x12x64xf32> to vector<12x64xf32>
    %cst_33 = arith.constant dense<0.000000e+00> : vector<64x64xf32>
    %27 = tpu.matmul %24, %26, %cst_33 {dimension_numbers = #tpu.dot_dimension_numbers<[1], [0], [0], [1], [0, 0, 1, 1], [], []>} : vector<64x12xf32>, vector<12x64xf32>, vector<64x64xf32> -> vector<64x64xf32>
    %28 = arith.addf %21, %27 : vector<64x64xf32>
    %c0_34 = arith.constant 0 : index
    %c0_35 = arith.constant 0 : index
    %29 = vector.load %arg3[%c0_34, %c0_35] : memref<1x64xf32, #tpu.memory_space<vmem>>, vector<1x64xf32>
    %30 = vector.broadcast %29 : vector<1x64xf32> to vector<64x64xf32>
    %31 = arith.addf %28, %30 : vector<64x64xf32>
    %cst_36 = arith.constant 2.000000e-01 : f32
    %32 = vector.broadcast %cst_36 : f32 to vector<64x64xf32>
    %33 = arith.mulf %32, %31 : vector<64x64xf32>
    %34 = arith.maximumf %31, %33 : vector<64x64xf32>
    %35 = arith.truncf %34 : vector<64x64xf32> to vector<64x64xbf16>
    %c0_37 = arith.constant 0 : index
    %c0_38 = arith.constant 0 : index
    %c0_39 = arith.constant 0 : index
    %36 = vector.load %arg4[%c0_37, %c0_38, %c0_39] : memref<1x64x64xbf16, #tpu.memory_space<vmem>>, vector<1x64x64xbf16>
    %37 = vector.shape_cast %36 : vector<1x64x64xbf16> to vector<64x64xbf16>
    %38 = vector.shape_cast %35 : vector<64x64xbf16> to vector<1x64x64xbf16>
    tpu.vector_store %arg4[%c0_37, %c0_38, %c0_39], %38 {strides = array<i32>} : memref<1x64x64xbf16, #tpu.memory_space<vmem>>, vector<1x64x64xbf16>,
    return
  }
  func.func @transform_0(%arg0: i32) -> (i32, i32, i32, i32) {
    %c0_i32 = arith.constant 0 : i32
    %c0_i32_0 = arith.constant 0 : i32
    %c0_i32_1 = arith.constant 0 : i32
    %c0_i32_2 = arith.constant 0 : i32
    return %arg0, %c0_i32, %c0_i32_0, %c0_i32_1 : i32, i32, i32, i32
  }
  func.func @transform_1(%arg0: i32) -> (i32, i32, i32, i32) {
    %c0_i32 = arith.constant 0 : i32
    %c0_i32_0 = arith.constant 0 : i32
    %c0_i32_1 = arith.constant 0 : i32
    %c0_i32_2 = arith.constant 0 : i32
    %c0_i32_3 = arith.constant 0 : i32
    return %c0_i32, %c0_i32_0, %c0_i32_1, %c0_i32_2 : i32, i32, i32, i32
  }
  func.func @transform_2(%arg0: i32) -> (i32, i32) {
    %c0_i32 = arith.constant 0 : i32
    %c0_i32_0 = arith.constant 0 : i32
    %c0_i32_1 = arith.constant 0 : i32
    return %c0_i32, %c0_i32_0 : i32, i32
  }
  func.func @transform_3(%arg0: i32) -> (i32, i32, i32) {
    %c0_i32 = arith.constant 0 : i32
    %c0_i32_0 = arith.constant 0 : i32
    %c0_i32_1 = arith.constant 0 : i32
    return %arg0, %c0_i32, %c0_i32_0 : i32, i32, i32
  }
}

</mosaic_0001>

<bundles_post_ra>
// kernel: tpu_custom_call.1
= control target key start
LH: loop header
LB: loop body
LE: loop exit
PB: predicated region body
PF: predicated region fallthrough
CT: control target
= control target key end

     0   :  { %8 = vsyncpa [#allocation3], 0  ;;  %s1502_s0 = inlined_call_operand.vmem [shape: f32[2,9,9,12], index: 0, kind: input, shape index: {}]   ;;  %s1503_s1 = inlined_call_operand.vmem [shape: f32[2,2,12,64], index: 1, kind: input, shape index: {}]   ;;  %s1504_s2 = inlined_call_operand.vmem [shape: f32[1,64], index: 2, kind: input, shape index: {}]   ;;  %s1505_s3 = inlined_call_operand.hbm [shape: bf16[2,64,64], index: 3, kind: output, shape index: {}]  }
   0x1   :  { %10 = vsyncpa [#allocation3 + $0x1], 0  ;;  %s1277_s12 = smov 0   ;;  %s1279_s13 = smov 0  }
   0x2   :  { %s1281_s14 = smov 0   ;;  %s1283_s15 = smov 0  }
   0x3 LB: > { %s1298_s16 = sadd.s32 4294967295, %s1251_s15   ;;  %s907_s17 = sadd.s32 4294967294, %s1251_s15   ;;  %s1251_s15 = sphi %s1283_s15, %s1513_s15   ;;  %s1247_s14 = sphi %s1281_s14, %s1512_s14   ;;  %s1243_s13 = sphi %s1279_s13, %s1511_s13   ;;  %s1239_s12 = sphi %s1277_s12, %s1510_s12  }
   0x4   : > { %s1302_s18 = sadd.s32 1, %s1251_s15   ;;  %s91_s19 = sadd.s32 1, %s1247_s14 }
   0x5   : > { %s88_s20 = ssub.s32 %s1251_s15, %s1302_s18  ;;  %p101_p0 = scmp.ne.s32.totalorder %s1247_s14, %s1243_s13 }
   0x6   : > { %p89_p1 = scmp.eq.s32.totalorder %s88_s20, 0  ;;  %p102_p2 = scmp.eq.s32.totalorder %s1298_s16, 1 }
   0x7   : > { %p107_p3 = scmp.ne.s32.totalorder %s1243_s13, %s1239_s12  ;;  %p108_p4 = scmp.eq.s32.totalorder %s907_s17, 1 }
   0x8   : > { %s1313_s21 = scalar_select %p89_p1, %s1247_s14, %s91_s19  }
   0x9   : > { %p1315_p5 = por %p102_p2, %p101_p0  ;;  %p1319_p6 = por %p108_p4, %p107_p3 }
   0xa   : > { %p910_p7 = scmp.ge.s32.totalorder %s1251_s15, 1  ;;  %p140_p8 = scmp.lt.s32.totalorder %s1251_s15, 3 }
   0xc   : > { %p141_p9 = pnand %p910_p7, %p140_p8 }
   0xd   : > { %v913_v0 = vld [vmem:[%s1503_s1 + $0x10] sm:$0xff] (!%p141_p9)  ;;  %v914_v1 = vld [vmem:[%s1503_s1 + $0x18] sm:$0xf] (!%p141_p9)  ;;  %vm215_vm0 = vcmask (!%p141_p9), 1043456   ;;  %v941_v2 = vld [vmem:[%s1503_s1 + $0x20] sm:$0xff] (!%p141_p9)  ;;  %vm1253_vm1 = vmmov (!%p141_p9), 1  }
   0xe   : > { %144 = sbr.rel (%p141_p9) target bundleno = 294 (0x126), region = 32  ;;  %v1098_v3 = vpack.c.bf16 (!%p141_p9), %v914_v1, %v913_v0  ;;  %vm1334_vm2 = vmpackc.low (!%p141_p9), %vm215_vm0, %vm1253_vm1  ;;  %v942_v5 = vld [vmem:[%s1503_s1 + $0x28] sm:$0xf] (!%p141_p9)  ;;  %p164_p10 = scmp.lt.s32.totalorder (!%p141_p9), %s1298_s16, 1  ;;  %v177_v6 = vld [vmem:[%s1503_s1] sm:$0xff] (!%p141_p9)  ;;  %vm190_vm3 = vcmask (!%p141_p9), 97280  }
   0xf   : > { %v1110_v7 = vpack.c.bf16 (!%p141_p9), %v942_v5, %v941_v2  ;;  %v178_v8 = vld [vmem:[%s1503_s1 + $0x8] sm:$0xf] (!%p141_p9)  ;;  %v960_v9 = vld [vmem:[%s1503_s1 + $0x30] sm:$0xff] (!%p141_p9)  ;;  %v961_v10 = vld [vmem:[%s1503_s1 + $0x38] sm:$0xf] (!%p141_p9)  ;;  %s161_s29 = sand.u32 (!%p141_p9), 1, %s1243_s13  }
  0x10   : > { %1100 = vmatprep.subr.msk.bf16.mxu1 (!%p141_p9), %vm1334_vm2, %v1098_v3  ;;  %v1104_v11 = vpack.c.bf16 (!%p141_p9), %v178_v8, %v177_v6  ;;  %v1116_v12 = vpack.c.bf16 (!%p141_p9), %v961_v10, %v960_v9  ;;  %v971_v33 = vld [vmem:[%s1504_s2] ss:$0 sm:$0xff] (!%p141_p9)  ;;  %s911_s30 = sshll.u32 (!%p141_p9), %s161_s29, 5  ;;  %vm822_vm4 = vcmask (!%p141_p9), 519168   ;;  %s993_s5 = sshll.u32 (!%p141_p9), %s1298_s16, 9 }
  0x11   : > { %1112 = vmatprep.subr.msk.bf16.mxu0 (!%p141_p9), %vm1334_vm2, %v1110_v7  ;;  %1103 = vmatpush3.bf16.msk.msra.mxu1 (!%p141_p9), %vm1334_vm2, %v1098_v3  ;;  %s1432_s4 = scalar_lea.vmem (!%p141_p9), [#allocation2], %s911_s30  ;;  %s1451_s9 = scalar_lea.hbm (!%p141_p9), %s1505_s3, %s993_s5 }
  0x12   : > { %1115 = vmatpush3.bf16.msk.msra.mxu0 (!%p141_p9), %vm1334_vm2, %v1110_v7  ;;  %1106 = vmatprep.subr.msk.bf16.mxu1 (!%p141_p9), %vm1334_vm2, %v1104_v11  ;;  %s845_s6 = sshll.u32 (!%p141_p9), %s1432_s4, 4  ;;  %s1254_s11 = smov (!%p141_p9), [#allocation2]   ;;  %s1453_s6 = int_to_ptr.vmem [resolvable:$true] %s845_s6 }
  0x13   : > { %1118 = vmatprep.subr.msk.bf16.mxu0 (!%p141_p9), %vm1334_vm2, %v1116_v12  ;;  %s1189_s10 = scalar_lea.vmem (!%p141_p9), %s1453_s6, 512  ;;  %s1193_s17 = sshll.u32 (!%p141_p9), %s1254_s11, 4  ;;  %s1194_s17 = int_to_ptr.vmem [resolvable:$false] %s1193_s17 }
  0x14   : > { %p1190_p11 = scmp.ne.s32.totalorder (!%p141_p9), %s1453_s6, %s1189_s10  ;;  %p1196_p0 = scmp.lt.s32.totalorder (!%p141_p9), %s1453_s6, %s1194_s17 }
  0x15   : > { %s165_s19 = scalar_select %p164_p10, %s1298_s16, 1 }
  0x16   : > { %s1461_s16 = scalar_lea.sflag [#allocation3], %s161_s29  ;;  %p1191_p12 = pnand %p1190_p11, %p1315_p5 }
  0x17   : > { %s1146_s20 = smul.u32 144, %s165_s19  ;;  %s1195_s19 = scalar_lea.vmem %s1194_s17, 1024 }
  0x18   : > { %p1192_p13 = pneg %p1191_p12  ;;  %p1197_p1 = scmp.lt.s32.totalorder %s1195_s19, %s1189_s10 }
  0x19   : > { %s1370_s26 = scalar_lea.vmem %s1502_s0, %s1146_s20 }
  0x1a   : > { %v179_v13 = vld [vmem:[%s1370_s26 + $0x1] sm:$0xff]  ;;  %v933_v14 = vld [vmem:[%s1370_s26 + $0x10] sm:$0xff]  ;;  %p1198_p2 = por %p1197_p1, %p1196_p0 }
  0x1b   : > { %v180_v15 = vld [vmem:[%s1370_s26 + $0x11] sm:$0xff]  ;;  %1038 = vmatprep.mubr.msk.f32.mxu1 %vm190_vm3, %v179_v13  ;;  %1070 = vmatprep.mubr.msk.f32.mxu0 %vm190_vm3, %v933_v14  ;;  %v934_v16 = vld [vmem:[%s1370_s26 + $0x20] sm:$0xff] }
  0x1c   : > { %v181_v17 = vld [vmem:[%s1370_s26 + $0x21] sm:$0xff]  ;;  %v935_v18 = vld [vmem:[%s1370_s26 + $0x30] sm:$0xff]  ;;  %1039 = vmatmul.mubr.msk.f32.vlgmr.msra.gmra.mrb[0].mxu1 %vm190_vm3, %v180_v15  ;;  %1071 = vmatmul.mubr.msk.f32.vlgmr.msra.gmra.mrb[0].mxu0 %vm190_vm3, %v934_v16  ;;  %p1199_p3 = pnand %p1198_p2, %p1192_p13 }
  0x1d   : > { %1109 = vmatpush3.bf16.msk.msra.mxu1 %vm1334_vm2, %v1104_v11  ;;  %1121 = vmatpush3.bf16.msk.msra.mxu0 %vm1334_vm2, %v1116_v12  ;;  %v182_v19 = vld [vmem:[%s1370_s26 + $0x31] sm:$0xff]  ;;  %v936_v20 = vld [vmem:[%s1370_s26 + $0x40] sm:$0xff] }
  0x1e   : > { %1041 = vmatprep.mubr.msk.f32.mxu1 %vm190_vm3, %v181_v17  ;;  %1073 = vmatprep.mubr.msk.f32.mxu0 %vm190_vm3, %v935_v18  ;;  %v183_v21 = vld [vmem:[%s1370_s26 + $0x41] sm:$0xff]  ;;  %v937_v22 = vld [vmem:[%s1370_s26 + $0x50] sm:$0xff] }
  0x1f   : > { %v184_v23 = vld [vmem:[%s1370_s26 + $0x51] sm:$0xff]  ;;  %v938_v24 = vld [vmem:[%s1370_s26 + $0x60] sm:$0xff] }
  0x20   : > { %1042 = vmatmul.mubr.msk.f32.gmra.mrb[2].mxu1 %vm190_vm3, %v182_v19  ;;  %1074 = vmatmul.mubr.msk.f32.gmra.mrb[2].mxu0 %vm190_vm3, %v936_v20  ;;  %v185_v25 = vld [vmem:[%s1370_s26 + $0x61] sm:$0xff]  ;;  %v939_v26 = vld [vmem:[%s1370_s26 + $0x70] sm:$0xff] }
  0x21   : > { %1044 = vmatprep.mubr.msk.f32.mxu1 %vm190_vm3, %v183_v21  ;;  %1076 = vmatprep.mubr.msk.f32.mxu0 %vm190_vm3, %v937_v22  ;;  %v186_v27 = vld [vmem:[%s1370_s26 + $0x71] sm:$0xff]  ;;  %v940_v28 = vld [vmem:[%s1370_s26 + $0x80] sm:$0xff] }
  0x22   : > { %v169_v29 = vld [vmem:[%s1370_s26] sm:$0xff] }
  0x23   : > { %v959_v30 = vld [vmem:[%s1370_s26 + $0x81] sm:$0xff] }
  0x24   : > { %1045 = vmatmul.mubr.msk.f32.gmra.mrb[4].mxu1 %vm190_vm3, %v184_v23  ;;  %1077 = vmatmul.mubr.msk.f32.gmra.mrb[4].mxu0 %vm190_vm3, %v938_v24 }
  0x25   : > { %1047 = vmatprep.mubr.msk.f32.mxu1 %vm190_vm3, %v185_v25  ;;  %1079 = vmatprep.mubr.msk.f32.mxu0 %vm190_vm3, %v939_v26 }
  0x28   : > { %1048 = vmatmul.mubr.msk.f32.gmra.mrb[6].mxu1 %vm190_vm3, %v186_v27  ;;  %1080 = vmatmul.mubr.msk.f32.gmra.mrb[6].mxu0 %vm190_vm3, %v940_v28 }
  0x29   : > { %1054 = vmatprep.mubr.msk.f32.mxu1 %vm190_vm3, %v169_v29  ;;  %1086 = vmatprep.mubr.msk.f32.mxu0 %vm190_vm3, %v180_v15 }
  0x2c   : > { %1055 = vmatmul.mubr.msk.f32.vlgmr.msra.gmra.mrb[0].mxu1 %vm190_vm3, %v933_v14  ;;  %1087 = vmatmul.mubr.msk.f32.vlgmr.msra.gmra.mrb[0].mxu0 %vm190_vm3, %v181_v17 }
  0x2d   : > { %1057 = vmatprep.mubr.msk.f32.mxu1 %vm190_vm3, %v934_v16  ;;  %1089 = vmatprep.mubr.msk.f32.mxu0 %vm190_vm3, %v182_v19 }
  0x30   : > { %1058 = vmatmul.mubr.msk.f32.gmra.mrb[2].mxu1 %vm190_vm3, %v935_v18  ;;  %1090 = vmatmul.mubr.msk.f32.gmra.mrb[2].mxu0 %vm190_vm3, %v183_v21 }
  0x31   : > { %1060 = vmatprep.mubr.msk.f32.mxu1 %vm190_vm3, %v936_v20  ;;  %1092 = vmatprep.mubr.msk.f32.mxu0 %vm190_vm3, %v184_v23 }
  0x34   : > { %1061 = vmatmul.mubr.msk.f32.gmra.mrb[4].mxu1 %vm190_vm3, %v937_v22  ;;  %1093 = vmatmul.mubr.msk.f32.gmra.mrb[4].mxu0 %vm190_vm3, %v185_v25 }
  0x35   : > { %1063 = vmatprep.mubr.msk.f32.mxu1 %vm190_vm3, %v938_v24  ;;  %1095 = vmatprep.mubr.msk.f32.mxu0 %vm190_vm3, %v186_v27 }
  0x38   : > { %1064 = vmatmul.mubr.msk.f32.gmra.mrb[6].mxu1 %vm190_vm3, %v939_v26  ;;  %1096 = vmatmul.mubr.msk.f32.gmra.mrb[6].mxu0 %vm190_vm3, %v959_v30 }
  0xff   : > { %v1056_v31 = vpop.f32.mrb[0].mxu1  ;;  %v1088_v32 = vpop.f32.mrb[0].mxu0 }
 0x100   : > { %v1122_v34 = vadd.f32 %v1088_v32, %v1056_v31  ;;  %v417_v35 = vpop.f32.mrb[1].mxu1  ;;  %v712_v36 = vpop.f32.mrb[1].mxu0 }
 0x101   : > { %v1123_v37 = vadd.f32 %v712_v36, %v417_v35 }
 0x102   : > { %v767_v38 = vadd.f32 %v1122_v34, %v971_v33 }
 0x103   : > { %v766_v39 = vadd.f32 %v1123_v37, %v971_v33  ;;  %v1059_v40 = vpop.f32.mrb[2].mxu1  ;;  %v1091_v41 = vpop.f32.mrb[2].mxu0 }
 0x104   : > { %v775_v42 = vmul.f32 0.2, %v767_v38  ;;  %v1124_v43 = vadd.f32 %v1091_v41, %v1059_v40  ;;  %v427_v44 = vpop.f32.mrb[3].mxu1  ;;  %v722_v45 = vpop.f32.mrb[3].mxu0 }
 0x105   : > { %v774_v46 = vmul.f32 0.2, %v766_v39  ;;  %v1125_v47 = vadd.f32 %v722_v45, %v427_v44 }
 0x106   : > { %v783_v48 = vmax.f32 %v767_v38, %v775_v42  ;;  %v769_v49 = vadd.f32 %v1124_v43, %v971_v33 }
 0x107   : > { %v782_v50 = vmax.f32 %v766_v39, %v774_v46  ;;  %v768_v51 = vadd.f32 %v1125_v47, %v971_v33  ;;  %v1062_v52 = vpop.f32.mrb[4].mxu1  ;;  %v1094_v53 = vpop.f32.mrb[4].mxu0 }
 0x108   : > { %v986_v54 = vpack.c.bf16 %v783_v48, %v783_v48  ;;  %v777_v55 = vmul.f32 0.2, %v769_v49  ;;  %v1126_v56 = vadd.f32 %v1094_v53, %v1062_v52  ;;  %v437_v57 = vpop.f32.mrb[5].mxu1  ;;  %v732_v58 = vpop.f32.mrb[5].mxu0 }
 0x109   : > { %v985_v59 = vpack.c.bf16 %v782_v50, %v782_v50  ;;  %v776_v60 = vmul.f32 0.2, %v768_v51  ;;  %v1127_v61 = vadd.f32 %v732_v58, %v437_v57 }
 0x10a   : > { %824 = vst.msk [vmem:[%s1432_s4 + $0x4] sm:$0xf] %vm822_vm4, %v986_v54  ;;  %v785_v62 = vmax.f32 %v769_v49, %v777_v55  ;;  %v771_v63 = vadd.f32 %v1126_v56, %v971_v33 }
 0x10b   : > { %823 = vst.msk [vmem:[%s1432_s4] sm:$0xf] %vm822_vm4, %v985_v59  ;;  %v784_v0 = vmax.f32 %v768_v51, %v776_v60  ;;  %v770_v1 = vadd.f32 %v1127_v61, %v971_v33  ;;  %v1065_v2 = vpop.f32.mrb[6].mxu1  ;;  %v1097_v3 = vpop.f32.mrb[6].mxu0 }
 0x10c   : > { %v988_v4 = vpack.c.bf16 %v785_v62, %v785_v62  ;;  %v779_v5 = vmul.f32 0.2, %v771_v63  ;;  %v1128_v6 = vadd.f32 %v1097_v3, %v1065_v2  ;;  %v447_v7 = vpop.f32.mrb[7].mxu1  ;;  %v742_v8 = vpop.f32.mrb[7].mxu0 }
 0x10d   : > { %v987_v9 = vpack.c.bf16 %v784_v0, %v784_v0  ;;  %v778_v10 = vmul.f32 0.2, %v770_v1  ;;  %v1129_v11 = vadd.f32 %v742_v8, %v447_v7 }
 0x10e   : > { %826 = vst.msk [vmem:[%s1432_s4 + $0xc] sm:$0xf] %vm822_vm4, %v988_v4  ;;  %v787_v12 = vmax.f32 %v771_v63, %v779_v5  ;;  %v773_v13 = vadd.f32 %v1128_v6, %v971_v33 }
 0x10f   : > { %825 = vst.msk [vmem:[%s1432_s4 + $0x8] sm:$0xf] %vm822_vm4, %v987_v9  ;;  %v786_v14 = vmax.f32 %v770_v1, %v778_v10  ;;  %v772_v15 = vadd.f32 %v1129_v11, %v971_v33 }
 0x110   : > { %v990_v16 = vpack.c.bf16 %v787_v12, %v787_v12  ;;  %v781_v17 = vmul.f32 0.2, %v773_v13 }
 0x111   : > { %v989_v18 = vpack.c.bf16 %v786_v14, %v786_v14  ;;  %v780_v19 = vmul.f32 0.2, %v772_v15 }
 0x112   : > { %828 = vst.msk [vmem:[%s1432_s4 + $0x14] sm:$0xf] %vm822_vm4, %v990_v16  ;;  %v789_v20 = vmax.f32 %v773_v13, %v781_v17 }
 0x113   : > { %827 = vst.msk [vmem:[%s1432_s4 + $0x10] sm:$0xf] %vm822_vm4, %v989_v18  ;;  %v788_v21 = vmax.f32 %v772_v15, %v780_v19 }
 0x114   : > { %v992_v22 = vpack.c.bf16 %v789_v20, %v789_v20 }
 0x115   : > { %v991_v23 = vpack.c.bf16 %v788_v21, %v788_v21 }
 0x116   : > { %830 = vst.msk [vmem:[%s1432_s4 + $0x1c] sm:$0xf] %vm822_vm4, %v992_v22 }
 0x117   : > { %829 = vst.msk [vmem:[%s1432_s4 + $0x18] sm:$0xf] %vm822_vm4, %v991_v23 }
 0x118   : > { %1202 = shalt.err (!%p1199_p3)
}
 0x119   : > { %s1203_s20 = scalar_lea.hbm %s1451_s9, 512  ;;  %s1207_s26 = scalar_lea.hbm %s1505_s3, 1024 }
 0x11a   : > { %p1204_p4 = scmp.ne.s32.totalorder %s1451_s9, %s1203_s20  ;;  %p1208_p9 = scmp.lt.u32.totalorder %s1451_s9, %s1505_s3 }
 0x11b   : > { %p1209_p10 = scmp.lt.u32.totalorder %s1207_s26, %s1203_s20  ;;  %p1211_p12 = scmp.lt.u32.totalorder %s1203_s20, %s1451_s9 }
 0x11c   : > { %p1205_p7 = pnand %p1204_p4, %p1315_p5 }
 0x11d   : > { %p1210_p11 = por %p1209_p10, %p1208_p9 }
 0x11e   : > { %p1206_p8 = pneg %p1205_p7 }
 0x11f   : > { %p1212_p13 = por %p1211_p12, %p1210_p11 }
 0x121   : > { %p1213_p0 = pnand %p1212_p13, %p1206_p8 }
 0x123   : > { %1216 = shalt.err (!%p1213_p0)
}
 0x124   : > { %s1255_s29 = smov 64   ;;  %s1256_s30 = smov 4  }
 0x125   : > { %1147 = dma.vmem_to_hbm [thread:$0]  (%p1315_p5), %s1453_s6, 512, %s1451_s9, %s1461_s16, %s1255_s29, %s1255_s29, %s1256_s30  }
 0x126 PF: > { %p1153_p1 = scmp.ge.s32.totalorder %s1251_s15, 2  ;;  %s860_s4 = sand.u32 1, %s1239_s12  }
 0x127   : > { %s861_s5 = scalar_lea.sflag [#allocation3], %s860_s4 }
 0x128   : > { %p1150_p2 = pnand %p1153_p1, %p1319_p6 }
 0x12a   : > { %1234 = dma.done.wait (!%p1150_p2), %s861_s5, 512  }
 0x12b   : > { %1236 = vsyncadd (!%p1150_p2), %s861_s5, 4294966784  ;;  %p13_p3 = scmp.ge.s32.totalorder %s1302_s18, 4   ;;  %s1510_s12 = smov %s1243_s13 }
 0x12c   : > { %s1511_s13 = smov %s1247_s14  ;;  %s1512_s14 = smov %s1313_s21 }
 0x12d   : > { %s1513_s15 = smov %s1302_s18  ;;  %15 = sbr.rel (!%p13_p3) target bundleno = 3 (0x3), region = 71 }
 0x134   :  { %866 = vsyncpa [#allocation3], 1 }
 0x135   :  { %868 = vsyncpa [#allocation3 + $0x1], 1 }

</bundles_post_ra>
